<compile_context>
chip_gen: v7x
topology: tpu7x:2x2x1
jax: 0.10.0
libtpu: 0.0.40
codegen_flags: <defaults>
</compile_context>

<pallas_src>
import jax
import jax.numpy as jnp
from jax.experimental import pallas as pl
from jax.experimental.pallas import tpu as pltpu

_LANES = 128
_SUBLANES = 8


def _make_bpr_kernel(tile_rows: int, n_valid: int, n_padded: int):
    """Kernel factory (tile_rows / valid-count are static)."""
    need_mask = n_valid < n_padded

    def kernel(pos_ref, neg_ref, out_ref):
        pos = pos_ref[...].astype(jnp.float32)
        neg = neg_ref[...].astype(jnp.float32)
        dist = pos - neg

        # Numerically stable softplus(-dist) == log(1 + exp(-dist)).
        sp = jnp.maximum(-dist, 0.0) + jnp.log1p(jnp.exp(-jnp.abs(dist)))

        if need_mask:
            # Zero the contribution of padded elements (only the tail block has
            # any, but the VPU compare/select is free filler on a DMA-bound kernel).
            i = pl.program_id(0)
            row = jax.lax.broadcasted_iota(jnp.int32, (tile_rows, _LANES), 0)
            lane = jax.lax.broadcasted_iota(jnp.int32, (tile_rows, _LANES), 1)
            flat = (i * tile_rows + row) * _LANES + lane
            sp = jnp.where(flat < n_valid, sp, 0.0)

        # Fold rows into native 8-sublane slabs: pure elementwise vreg adds.
        partial = jnp.sum(sp.reshape(tile_rows // _SUBLANES, _SUBLANES, _LANES), axis=0)
        out_ref[...] = partial  # (8, 128) lane-dense unmasked store

    return kernel


def bpr_loss(
    pos_preds: jax.Array,
    neg_preds: jax.Array,
    *,
    tile_rows: int | None = None,
    target_tile_bytes: int | None = None,
) -> jax.Array:
    assert pos_preds.shape == neg_preds.shape, "pos/neg predictions must match"
    n_valid = int(pos_preds.size)
    assert n_valid > 0
    itemsize = jnp.dtype(pos_preds.dtype).itemsize

    # ---- Generation-aware VMEM budget -------------------------------------
    try:
        vmem_cap = int(pltpu.get_tpu_info().vmem_capacity_bytes)
    except Exception:  # be robust if the query is unavailable
        vmem_cap = 64 * 1024 * 1024  # conservative (v7x per-TC)

    if target_tile_bytes is None:
        # ~4 MiB tiles on 128-MiB-VMEM parts (v5e/v6e), ~2 MiB on v7x (64 MiB).
        target_tile_bytes = (4 << 20) if vmem_cap >= (96 << 20) else (2 << 20)

    # ---- Tile-row selection (no divisor requirement) -----------------------
    rows_total = -(-n_valid // _LANES)                      # cdiv(n, 128)
    rows_rounded = -(-rows_total // _SUBLANES) * _SUBLANES  # round up to 8

    if tile_rows is None:
        tile_rows = (target_tile_bytes // (_LANES * itemsize)) // _SUBLANES * _SUBLANES
    tile_rows = max(_SUBLANES, (tile_rows // _SUBLANES) * _SUBLANES)

    # Cap tile so 2 inputs x 2 pipeline buffers + f32 temporaries fit in ~50% VMEM.
    per_row_bytes = _LANES * (2 * 2 * itemsize + 3 * 4)
    max_rows_vmem = max(_SUBLANES,
                        int((0.5 * vmem_cap) // per_row_bytes) // _SUBLANES * _SUBLANES)
    tile_rows = min(tile_rows, max_rows_vmem, rows_rounded)

    num_blocks = -(-rows_total // tile_rows)
    rows_padded = num_blocks * tile_rows
    n_padded = rows_padded * _LANES
    assert n_padded < 2**31, "flat-index mask uses int32"

    # ---- Pad + view as (rows_padded, 128) ----------------------------------
    pos_flat = pos_preds.reshape(-1)
    neg_flat = neg_preds.reshape(-1)
    if n_padded != n_valid:
        pad = n_padded - n_valid
        pos_flat = jnp.pad(pos_flat, (0, pad))
        neg_flat = jnp.pad(neg_flat, (0, pad))
    pos2d = pos_flat.reshape(rows_padded, _LANES)
    neg2d = neg_flat.reshape(rows_padded, _LANES)

    # ---- Explicit VMEM limit (budget the f32 intermediates too) ------------
    tile_bytes = tile_rows * _LANES * itemsize
    budget = (2 * 2 * tile_bytes                    # 2 inputs x 2 pipeline buffers
              + 3 * tile_rows * _LANES * 4          # f32 upcast / softplus temporaries
              + 2 * _SUBLANES * _LANES * 4          # output double buffer
              + (4 << 20))                          # headroom / internal scratch
    vmem_limit = int(min(budget, 0.75 * vmem_cap))

    kernel = _make_bpr_kernel(tile_rows, n_valid, n_padded)

    partials = pl.pallas_call(
        kernel,
        out_shape=jax.ShapeDtypeStruct((num_blocks, _SUBLANES, _LANES), jnp.float32),
        grid_spec=pltpu.PrefetchScalarGridSpec(
            num_scalar_prefetch=0,
            grid=(num_blocks,),
            in_specs=[
                pl.BlockSpec((tile_rows, _LANES), lambda i: (i, 0)),
                pl.BlockSpec((tile_rows, _LANES), lambda i: (i, 0)),
            ],
            out_specs=pl.BlockSpec((pl.Squeezed(), _SUBLANES, _LANES),
                                   lambda i: (i, 0, 0)),
        ),
        compiler_params=pltpu.CompilerParams(
            dimension_semantics=("parallel",),  # distinct output block per step
            vmem_limit_bytes=vmem_limit,
        ),
    )(pos2d, neg2d)

    # Tiny final reduction (num_blocks * 4 KiB) to a scalar.
    return jnp.sum(partials)


def _reference(pos, neg):
    return jnp.sum(jnp.log(1.0 + jnp.exp(-(pos - neg))))


if __name__ == "__main__":
    key = jax.random.PRNGKey(0)
    k_pos, k_neg, k_pos1, k_neg1 = jax.random.split(key, 4)

    # Small, deliberately unaligned 2-D shape (exercises padding + masking).
    n, d = 100, 200
    pos_preds = jax.random.normal(k_pos, (n, d), dtype=jnp.float32)
    neg_preds = jax.random.normal(k_neg, (n, d), dtype=jnp.float32)
    ref = _reference(pos_preds, neg_preds)

    # Auto-tiled path (single block at this size).
    loss_auto = jax.block_until_ready(bpr_loss(pos_preds, neg_preds))
    # Forced small tiles → multi-block path with a masked tail block.
    loss_multi = jax.block_until_ready(bpr_loss(pos_preds, neg_preds, tile_rows=16))

    assert jnp.allclose(loss_auto, ref, rtol=2e-5, atol=1e-2), (loss_auto, ref)
    assert jnp.allclose(loss_multi, ref, rtol=2e-5, atol=1e-2), (loss_multi, ref)

    # 1-D inputs (as PyTorch BPRLoss would also accept).
    m = 1000
    pos1 = jax.random.normal(k_pos1, (m,), dtype=jnp.float32)
    neg1 = jax.random.normal(k_neg1, (m,), dtype=jnp.float32)
    ref1 = _reference(pos1, neg1)
    loss1 = jax.block_until_ready(bpr_loss(pos1, neg1))
    assert jnp.allclose(loss1, ref1, rtol=2e-5, atol=1e-2), (loss1, ref1)

    print("KERNEL_OK")
</pallas_src>

<mosaic_0001>
module attributes {stable_mosaic.version = 11 : i64} {
  func.func @kernel(%arg0: i32, %arg1: memref<160x128xf32, #tpu.memory_space<vmem>>, %arg2: memref<160x128xf32, #tpu.memory_space<vmem>>, %arg3: memref<1x8x128xf32, #tpu.memory_space<vmem>>) attributes {dimension_semantics = [#tpu.dimension_semantics<parallel>], iteration_bounds = array<i64: 1>, scalar_prefetch = 0 : i64, scratch_operands = 0 : i64, tpu.core_type = #tpu.core_type<tc>, window_params = [{transform_indices = @transform_0, window_bounds = array<i64: 160, 128>}, {transform_indices = @transform_1, window_bounds = array<i64: 160, 128>}, {transform_indices = @transform_2, window_bounds = array<i64: 1, 8, 128>}]} {
    %c0 = arith.constant 0 : index
    %c0_0 = arith.constant 0 : index
    %0 = vector.load %arg1[%c0, %c0_0] : memref<160x128xf32, #tpu.memory_space<vmem>>, vector<160x128xf32>
    %c0_1 = arith.constant 0 : index
    %c0_2 = arith.constant 0 : index
    %1 = vector.load %arg2[%c0_1, %c0_2] : memref<160x128xf32, #tpu.memory_space<vmem>>, vector<160x128xf32>
    %2 = arith.subf %0, %1 : vector<160x128xf32>
    %cst = arith.constant 0.000000e+00 : f32
    %3 = vector.broadcast %cst : f32 to vector<160x128xf32>
    %4 = arith.subf %3, %2 : vector<160x128xf32>
    %cst_3 = arith.constant 0.000000e+00 : f32
    %5 = vector.broadcast %cst_3 : f32 to vector<160x128xf32>
    %6 = arith.maximumf %4, %5 : vector<160x128xf32>
    %7 = math.absf %2 : vector<160x128xf32>
    %cst_4 = arith.constant 0.000000e+00 : f32
    %8 = vector.broadcast %cst_4 : f32 to vector<160x128xf32>
    %9 = arith.subf %8, %7 : vector<160x128xf32>
    %10 = math.exp %9 : vector<160x128xf32>
    %11 = math.log1p %10 : vector<160x128xf32>
    %12 = arith.addf %6, %11 : vector<160x128xf32>
    %13 = tpu.iota {dimensions = array<i32: 0>} : vector<160x128xi32>
    %14 = tpu.iota {dimensions = array<i32: 1>} : vector<160x128xi32>
    %c160_i32 = arith.constant 160 : i32
    %15 = arith.muli %arg0, %c160_i32 : i32
    %16 = vector.broadcast %15 : i32 to vector<160x128xi32>
    %17 = arith.addi %16, %13 : vector<160x128xi32>
    %c128_i32 = arith.constant 128 : i32
    %18 = vector.broadcast %c128_i32 : i32 to vector<160x128xi32>
    %19 = arith.muli %17, %18 : vector<160x128xi32>
    %20 = arith.addi %19, %14 : vector<160x128xi32>
    %c20000_i32 = arith.constant 20000 : i32
    %21 = vector.broadcast %c20000_i32 : i32 to vector<160x128xi32>
    %22 = arith.cmpi slt, %20, %21 : vector<160x128xi32>
    %cst_5 = arith.constant 0.000000e+00 : f32
    %23 = vector.broadcast %cst_5 : f32 to vector<160x128xf32>
    %24 = arith.select %22, %12, %23 : vector<160x128xi1>, vector<160x128xf32>
    %25 = vector.shape_cast %24 : vector<160x128xf32> to vector<20x8x128xf32>
    %cst_6 = arith.constant dense<0.000000e+00> : vector<8x128xf32>
    %26 = vector.multi_reduction <add>, %25, %cst_6 [0] : vector<20x8x128xf32> to vector<8x128xf32>
    %c0_7 = arith.constant 0 : index
    %c0_8 = arith.constant 0 : index
    %c0_9 = arith.constant 0 : index
    %27 = vector.load %arg3[%c0_7, %c0_8, %c0_9] : memref<1x8x128xf32, #tpu.memory_space<vmem>>, vector<1x8x128xf32>
    %28 = vector.shape_cast %27 : vector<1x8x128xf32> to vector<8x128xf32>
    %29 = vector.shape_cast %26 : vector<8x128xf32> to vector<1x8x128xf32>
    tpu.vector_store %arg3[%c0_7, %c0_8, %c0_9], %29 {strides = array<i32>} : memref<1x8x128xf32, #tpu.memory_space<vmem>>, vector<1x8x128xf32>,
    return
  }
  func.func @transform_0(%arg0: i32) -> (i32, i32) {
    %c0_i32 = arith.constant 0 : i32
    %c0_i32_0 = arith.constant 0 : i32
    return %arg0, %c0_i32 : i32, i32
  }
  func.func @transform_1(%arg0: i32) -> (i32, i32) {
    %c0_i32 = arith.constant 0 : i32
    %c0_i32_0 = arith.constant 0 : i32
    return %arg0, %c0_i32 : i32, i32
  }
  func.func @transform_2(%arg0: i32) -> (i32, i32, i32) {
    %c0_i32 = arith.constant 0 : i32
    %c0_i32_0 = arith.constant 0 : i32
    %c0_i32_1 = arith.constant 0 : i32
    return %arg0, %c0_i32, %c0_i32_0 : i32, i32, i32
  }
}

</mosaic_0001>

<bundles_post_ra>
// kernel: tpu_custom_call.1
= control target key start
LH: loop header
LB: loop body
LE: loop exit
PB: predicated region body
PF: predicated region fallthrough
CT: control target
= control target key end

     0   :  { %7 = vsyncpa [#allocation3], 0  ;;  %s1380_s0 = inlined_call_operand.hbm [shape: f32[160,128], index: 0, kind: input, shape index: {}]   ;;  %s1381_s1 = inlined_call_operand.hbm [shape: f32[160,128], index: 1, kind: input, shape index: {}]   ;;  %s1382_s2 = inlined_call_operand.hbm [shape: f32[1,8,128], index: 2, kind: output, shape index: {}]  }
   0x1   :  { %8 = vsyncpa [#allocation6], 0 }
   0x2   :  { %9 = vsyncpa [#allocation4], 0  ;;  %s738_s9 = smov [#allocation2]   ;;  %s666_s13 = scalar_lea.hbm %s1380_s0, 2560 }
   0x3   :  { %s15_s10 = sshll.u32 %s738_s9, 4  ;;  %p667_p0 = scmp.ne.s32.totalorder %s1380_s0, %s666_s13  ;;  %s16_s10 = int_to_ptr.vmem [resolvable:$true] %s15_s10 }
   0x4   :  { %p670_p1 = scmp.lt.u32.totalorder %s666_s13, %s1380_s0 }
   0x6   :  { %p672_p2 = pnand %p670_p1, %p667_p0 }
   0x8   :  { %675 = shalt.err (!%p672_p2)
}
   0x9   :  { %s676_s18 = scalar_lea.vmem %s16_s10, 2560  ;;  %p681_p4 = scmp.lt.s32.totalorder %s16_s10, %s16_s10 }
   0xa   :  { %p677_p3 = scmp.ne.s32.totalorder %s16_s10, %s676_s18  ;;  %p682_p5 = scmp.lt.s32.totalorder %s676_s18, %s676_s18 }
   0xc   :  { %p683_p6 = por %p682_p5, %p681_p4 }
   0xe   :  { %p684_p7 = pnand %p683_p6, %p677_p3 }
  0x10   :  { %687 = shalt.err (!%p684_p7)
}
  0x11   :  { %s739_s19 = smov 128   ;;  %s740_s20 = smov 8  }
  0x12   :  { %21 = dma.hbm_to_vmem [thread:$0]  %s1380_s0, 2560, %s16_s10, [#allocation3], %s739_s19, %s739_s19, %s740_s20  }
  0x13   :  { %s741_s23 = smov [#allocation5]   ;;  %s688_s27 = scalar_lea.hbm %s1381_s1, 2560 }
  0x14   :  { %s27_s24 = sshll.u32 %s741_s23, 4  ;;  %p689_p8 = scmp.ne.s32.totalorder %s1381_s1, %s688_s27  ;;  %s28_s24 = int_to_ptr.vmem [resolvable:$true] %s27_s24 }
  0x15   :  { %p692_p9 = scmp.lt.u32.totalorder %s688_s27, %s1381_s1 }
  0x17   :  { %p694_p10 = pnand %p692_p9, %p689_p8 }
  0x19   :  { %697 = shalt.err (!%p694_p10)
}
  0x1a   :  { %s698_s4 = scalar_lea.vmem %s28_s24, 2560  ;;  %p703_p12 = scmp.lt.s32.totalorder %s28_s24, %s28_s24 }
  0x1b   :  { %p699_p11 = scmp.ne.s32.totalorder %s28_s24, %s698_s4  ;;  %p704_p13 = scmp.lt.s32.totalorder %s698_s4, %s698_s4 }
  0x1d   :  { %p705_p0 = por %p704_p13, %p703_p12 }
  0x1f   :  { %p706_p1 = pnand %p705_p0, %p699_p11 }
  0x21   :  { %709 = shalt.err (!%p706_p1)
}
  0x22   :  { %33 = dma.hbm_to_vmem [thread:$0]  %s1381_s1, 2560, %s28_s24, [#allocation6], %s739_s19, %s739_s19, %s740_s20  }
  0x23   :  { %732 = dma.done.wait [#allocation3], 2560  }
  0x24   :  { %733 = vsyncadd [#allocation3], 4294964736 }
  0x25   :  { %734 = dma.done.wait [#allocation6], 2560  }
  0x26   :  { %735 = vsyncadd [#allocation6], 4294964736  ;;  %v420_v0 = vlaneseq  ;;  %v40_v20 = vld [vmem:[#allocation2] sm:$0xff]  ;;  %v41_v21 = vld [vmem:[#allocation2 + $0x8] sm:$0xff]  ;;  %s742_s1 = smov [#allocation7]  }
  0x27   :  { %v42_v26 = vld [vmem:[#allocation2 + $0x10] sm:$0xff]  ;;  %v43_v27 = vld [vmem:[#allocation2 + $0x18] sm:$0xff]  ;;  %v44_v28 = vld [vmem:[#allocation2 + $0x20] sm:$0xff]  ;;  %s571_s6 = sshll.u32 %s742_s1, 4  ;;  %s572_s6 = int_to_ptr.vmem [resolvable:$true] %s571_s6 }
  0x28   :  { %v421_v1 = vshrl.u32 %v420_v0, 7  ;;  %v782_v7 = vand.u32 127, %v420_v0  ;;  %v60_v29 = vld [vmem:[#allocation5] sm:$0xff]  ;;  %v45_v33 = vld [vmem:[#allocation2 + $0x28] sm:$0xff]  ;;  %v46_v34 = vld [vmem:[#allocation2 + $0x30] sm:$0xff]  ;;  %s710_s7 = scalar_lea.vmem %s572_s6, 128  ;;  %p715_p3 = scmp.lt.s32.totalorder %s572_s6, %s572_s6 }
  0x29   :  { %v47_v35 = vld [vmem:[#allocation2 + $0x38] sm:$0xff]  ;;  %v61_v36 = vld [vmem:[#allocation5 + $0x8] sm:$0xff]  ;;  %v48_v41 = vld [vmem:[#allocation2 + $0x40] sm:$0xff]  ;;  %v827_v57 = vsub.f32 %v40_v20, %v60_v29  ;;  %p711_p2 = scmp.ne.s32.totalorder %s572_s6, %s710_s7  ;;  %p716_p4 = scmp.lt.s32.totalorder %s710_s7, %s710_s7 }
  0x2a   :  { %v422_v2 = vadd.s32 8, %v421_v1  ;;  %v423_v3 = vadd.s32 16, %v421_v1  ;;  %v424_v4 = vadd.s32 24, %v421_v1  ;;  %v425_v5 = vadd.s32 32, %v421_v1  ;;  %1394 = vst [vmem:[#allocation11_spill] sm:$0xff] %v782_v7  ;;  %v49_v42 = vld [vmem:[#allocation2 + $0x48] sm:$0xff] }
  0x2b   :  { %v426_v6 = vadd.s32 40, %v421_v1  ;;  %v784_v8 = vadd.s32 48, %v421_v1  ;;  %v786_v9 = vadd.s32 56, %v421_v1  ;;  %v788_v10 = vadd.s32 64, %v421_v1  ;;  %v50_v43 = vld [vmem:[#allocation2 + $0x50] sm:$0xff]  ;;  %v63_v45 = vld [vmem:[#allocation5 + $0x18] sm:$0xff]  ;;  %p717_p5 = por %p716_p4, %p715_p3 }
  0x2c   :  { %v790_v11 = vadd.s32 72, %v421_v1  ;;  %v792_v12 = vadd.s32 80, %v421_v1  ;;  %v794_v13 = vadd.s32 88, %v421_v1  ;;  %v465_v14 = vmul.u32 128, %v421_v1  ;;  %v62_v44 = vld [vmem:[#allocation5 + $0x10] sm:$0xff]  ;;  %v64_v46 = vld [vmem:[#allocation5 + $0x20] sm:$0xff] }
  0x2d   :  { %v466_v15 = vmul.u32 128, %v422_v2  ;;  %v796_v16 = vadd.s32 96, %v421_v1  ;;  %v798_v17 = vadd.s32 104, %v421_v1  ;;  %v467_v18 = vmul.u32 128, %v423_v3  ;;  %v51_v51 = vld [vmem:[#allocation2 + $0x58] sm:$0xff]  ;;  %v52_v52 = vld [vmem:[#allocation2 + $0x60] sm:$0xff]  ;;  %p718_p6 = pnand %p717_p5, %p711_p2 }
  0x2e   :  { %v468_v19 = vmul.u32 128, %v424_v4  ;;  %v800_v22 = vadd.s32 112, %v421_v1  ;;  %v802_v23 = vadd.s32 120, %v421_v1  ;;  %v469_v24 = vmul.u32 128, %v425_v5  ;;  %v53_v53 = vld [vmem:[#allocation2 + $0x68] sm:$0xff]  ;;  %v66_v55 = vld [vmem:[#allocation5 + $0x30] sm:$0xff] }
  0x2f   :  { %v470_v25 = vmul.u32 128, %v426_v6  ;;  %v804_v30 = vadd.s32 128, %v421_v1  ;;  %v806_v31 = vadd.s32 136, %v421_v1  ;;  %v471_v32 = vmul.u32 128, %v784_v8  ;;  %v65_v54 = vld [vmem:[#allocation5 + $0x28] sm:$0xff]  ;;  %v67_v56 = vld [vmem:[#allocation5 + $0x38] sm:$0xff] }
  0x30   :  { %v809_v37 = vadd.s32 144, %v421_v1  ;;  %v811_v38 = vadd.s32 152, %v421_v1  ;;  %v814_v39 = vadd.s32 %v465_v14, %v782_v7  ;;  %v817_v40 = vadd.s32 %v466_v15, %v782_v7  ;;  %v54_v61 = vld [vmem:[#allocation2 + $0x70] sm:$0xff]  ;;  %v55_v62 = vld [vmem:[#allocation2 + $0x78] sm:$0xff]  ;;  %v56_v63 = vld [vmem:[#allocation2 + $0x80] sm:$0xff] }
  0x31   :  { %v822_v49 = vadd.s32 %v467_v18, %v782_v7  ;;  %v825_v50 = vadd.s32 %v468_v19, %v782_v7  ;;  %v831_v59 = vadd.s32 %v469_v24, %v782_v7  ;;  %v834_v60 = vadd.s32 %v470_v25, %v782_v7  ;;  %v68_v0 = vld [vmem:[#allocation5 + $0x40] sm:$0xff]  ;;  %v69_v1 = vld [vmem:[#allocation5 + $0x48] sm:$0xff]  ;;  %v70_v2 = vld [vmem:[#allocation5 + $0x50] sm:$0xff] }
  0x32   :  { %1395 = vst [vmem:[#allocation12_spill] sm:$0xff] %v809_v37  ;;  %1396 = vst [vmem:[#allocation13_spill] sm:$0xff] %v811_v38  ;;  %v836_v3 = vsub.f32 %v41_v21, %v61_v36  ;;  %v841_v6 = vadd.s32 %v471_v32, %v782_v7  ;;  %v57_v8 = vld [vmem:[#allocation2 + $0x88] sm:$0xff]  ;;  %v58_v14 = vld [vmem:[#allocation2 + $0x90] sm:$0xff]  ;;  %v843_v24 = vsub.f32 %v42_v26, %v62_v44  ;;  %v100_v47 = vsub.f32 0.0, %v827_v57 }
  0x33   :  { %1397 = vst [vmem:[#allocation14_spill] sm:$0xff] %v817_v40  ;;  %1398 = vst [vmem:[#allocation15_spill] sm:$0xff] %v822_v49  ;;  %v59_v15 = vld [vmem:[#allocation2 + $0x98] sm:$0xff]  ;;  %v72_v19 = vld [vmem:[#allocation5 + $0x60] sm:$0xff]  ;;  %v845_v25 = vsub.f32 %v43_v27, %v63_v45  ;;  %v847_v29 = vsub.f32 %v44_v28, %v64_v46  ;;  %v850_v58 = vsub.f32 %v45_v33, %v65_v54  ;;  %vm505_vm10 = vcmp.lt.s32.totalorder %v814_v39, 20000 }
  0x34   :  { %1399 = vst [vmem:[#allocation16_spill] sm:$0xff] %v825_v50  ;;  %1400 = vst [vmem:[#allocation17_spill] sm:$0xff] %v831_v59  ;;  %v71_v18 = vld [vmem:[#allocation5 + $0x58] sm:$0xff]  ;;  %v73_v20 = vld [vmem:[#allocation5 + $0x68] sm:$0xff]  ;;  %v852_v32 = vsub.f32 %v46_v34, %v66_v55  ;;  %v854_v48 = vsub.f32 %v47_v35, %v67_v56  ;;  %v857_v27 = vsub.f32 %v48_v41, %v68_v0  ;;  %v101_v46 = vsub.f32 0.0, %v836_v3 }
  0x35   :  { %1401 = vst [vmem:[#allocation18_spill] sm:$0xff] %v834_v60  ;;  %1402 = vst [vmem:[#allocation19_spill] sm:$0xff] %v841_v6  ;;  %v74_v36 = vld [vmem:[#allocation5 + $0x70] sm:$0xff]  ;;  %v75_v4 = vld [vmem:[#allocation5 + $0x78] sm:$0xff]  ;;  %v859_v28 = vsub.f32 %v49_v42, %v69_v1  ;;  %v861_v45 = vsub.f32 %v50_v43, %v70_v2  ;;  %v864_v21 = vsub.f32 %v51_v51, %v71_v18  ;;  %v102_v35 = vsub.f32 0.0, %v843_v24 }
  0x36   :  { %v76_v5 = vld [vmem:[#allocation5 + $0x80] sm:$0xff]  ;;  %v77_v6 = vld [vmem:[#allocation5 + $0x88] sm:$0xff]  ;;  %v78_v26 = vld [vmem:[#allocation5 + $0x90] sm:$0xff]  ;;  %v866_v33 = vsub.f32 %v52_v52, %v72_v19  ;;  %v868_v34 = vsub.f32 %v53_v53, %v73_v20  ;;  %v871_v54 = vsub.f32 %v54_v61, %v74_v36  ;;  %v873_v55 = vsub.f32 %v55_v62, %v75_v4 }
  0x37   :  { %v79_v44 = vld [vmem:[#allocation5 + $0x98] sm:$0xff]  ;;  %v875_v41 = vsub.f32 %v56_v63, %v76_v5  ;;  %v103_v42 = vsub.f32 0.0, %v845_v25  ;;  %v878_v43 = vsub.f32 %v57_v8, %v77_v6  ;;  %v880_v56 = vsub.f32 %v58_v14, %v78_v26 }
  0x38   :  { %v882_v51 = vsub.f32 %v59_v15, %v79_v44  ;;  %v104_v52 = vsub.f32 0.0, %v847_v29  ;;  %v105_v53 = vsub.f32 0.0, %v850_v58  ;;  %v106_v0 = vsub.f32 0.0, %v852_v32 }
  0x39   :  { %1403 = vst [vmem:[#allocation20_spill] sm:$0xff] %v880_v56  ;;  %v107_v61 = vsub.f32 0.0, %v854_v48  ;;  %v108_v62 = vsub.f32 0.0, %v857_v27  ;;  %v109_v63 = vsub.f32 0.0, %v859_v28  ;;  %v110_v1 = vsub.f32 0.0, %v861_v45 }
  0x3a   :  { %1404 = vst [vmem:[#allocation21_spill] sm:$0xff] %v882_v51  ;;  %v111_v2 = vsub.f32 0.0, %v864_v21  ;;  %v112_v4 = vsub.f32 0.0, %v866_v33  ;;  %v113_v5 = vsub.f32 0.0, %v868_v34  ;;  %v114_v6 = vsub.f32 0.0, %v871_v54 }
  0x3b   :  { %v115_v8 = vsub.f32 0.0, %v873_v55  ;;  %v116_v14 = vsub.f32 0.0, %v875_v41  ;;  %v117_v15 = vsub.f32 0.0, %v878_v43  ;;  %v140_v20 = vand.u32 2147483647, %v827_v57 }
  0x3c   :  { %v901_v36 = vmax.f32 %v100_v47, 0.0  ;;  %v903_v26 = vmax.f32 %v101_v46, 0.0  ;;  %v905_v44 = vmax.f32 %v102_v35, 0.0  ;;  %v141_v60 = vand.u32 2147483647, %v836_v3 }
  0x3d   :  { %v908_v59 = vmax.f32 %v103_v42, 0.0  ;;  %v910_v50 = vmax.f32 %v104_v52, 0.0  ;;  %v912_v49 = vmax.f32 %v105_v53, 0.0  ;;  %v142_v18 = vand.u32 2147483647, %v843_v24 }
  0x3e   :  { %v915_v40 = vmax.f32 %v106_v0, 0.0  ;;  %v917_v19 = vmax.f32 %v107_v61, 0.0  ;;  %v919_v47 = vmax.f32 %v108_v62, 0.0  ;;  %v143_v57 = vand.u32 2147483647, %v845_v25 }
  0x3f   :  { %v922_v46 = vmax.f32 %v109_v63, 0.0  ;;  %v924_v35 = vmax.f32 %v110_v1, 0.0  ;;  %v144_v3 = vand.u32 2147483647, %v847_v29  ;;  %v160_v42 = vsub.f32 0.0, %v140_v20 }
  0x40   :  { %1405 = vst [vmem:[#allocation22_spill] sm:$0xff] %v919_v47  ;;  %v927_v52 = vmax.f32 %v111_v2, 0.0  ;;  %v929_v53 = vmax.f32 %v112_v4, 0.0  ;;  %v145_v24 = vand.u32 2147483647, %v850_v58  ;;  %v161_v0 = vsub.f32 0.0, %v141_v60 }
  0x41   :  { %1406 = vst [vmem:[#allocation23_spill] sm:$0xff] %v922_v46  ;;  %1407 = vst [vmem:[#allocation24_spill] sm:$0xff] %v924_v35  ;;  %v932_v61 = vmax.f32 %v113_v5, 0.0  ;;  %v934_v62 = vmax.f32 %v114_v6, 0.0  ;;  %v146_v25 = vand.u32 2147483647, %v852_v32 }
  0x42   :  { %1408 = vst [vmem:[#allocation25_spill] sm:$0xff] %v927_v52  ;;  %1409 = vst [vmem:[#allocation26_spill] sm:$0xff] %v929_v53  ;;  %v162_v63 = vsub.f32 0.0, %v142_v18  ;;  %v937_v46 = vmax.f32 %v115_v8, 0.0  ;;  %v147_v1 = vand.u32 2147483647, %v854_v48 }
  0x43   :  { %1410 = vst [vmem:[#allocation27_spill] sm:$0xff] %v932_v61  ;;  %1411 = vst [vmem:[#allocation28_spill] sm:$0xff] %v934_v62  ;;  %v148_v29 = vand.u32 2147483647, %v857_v27  ;;  %v163_v2 = vsub.f32 0.0, %v143_v57  ;;  %v941_v20 = vmax.f32 %v116_v14, 0.0 }
  0x44   :  { %1412 = vst [vmem:[#allocation29_spill] sm:$0xff] %v937_v46  ;;  %v149_v4 = vand.u32 2147483647, %v859_v28  ;;  %v164_v58 = vsub.f32 0.0, %v144_v3  ;;  %v180_v60 = vmul.f32 1.442695, %v160_v42 }
  0x45   :  { %1413 = vst [vmem:[#allocation30_spill] sm:$0xff] %v941_v20  ;;  %v944_v5 = vmax.f32 %v117_v15, 0.0  ;;  %v150_v6 = vand.u32 2147483647, %v861_v45  ;;  %v165_v62 = vsub.f32 0.0, %v145_v24  ;;  %v166_v18 = vsub.f32 0.0, %v146_v25 }
  0x46   :  { %v182_v32 = vmul.f32 1.442695, %v161_v0  ;;  %v151_v8 = vand.u32 2147483647, %v864_v21  ;;  %v184_v46 = vmul.f32 1.442695, %v162_v63  ;;  %586 = vpow2.f32 %v180_v60 }
  0x47   :  { %1414 = vst [vmem:[#allocation31_spill] sm:$0xff] %v944_v5  ;;  %v1415_v48 = vmul.u32 128, %v786_v9  ;;  %v152_v14 = vand.u32 2147483647, %v866_v33  ;;  %v167_v28 = vsub.f32 0.0, %v147_v1  ;;  %v1417_v15 = vmul.u32 128, %v788_v10 }
  0x48   :  { %v186_v57 = vmul.f32 1.442695, %v163_v2  ;;  %v153_v45 = vand.u32 2147483647, %v868_v34  ;;  %v168_v42 = vsub.f32 0.0, %v148_v29  ;;  %v169_v0 = vsub.f32 0.0, %v149_v4 }
  0x49   :  { %v951_v27 = vadd.s32 %v1415_v48, %v782_v7  ;;  %v957_v3 = vadd.s32 %v1417_v15, %v782_v7  ;;  %v188_v21 = vmul.f32 1.442695, %v164_v58  ;;  %v154_v24 = vand.u32 2147483647, %v871_v54 }
  0x4a   :  { %588 = vpow2.f32 %v182_v32  ;;  %v190_v9 = vmul.f32 1.442695, %v165_v62  ;;  %v155_v25 = vand.u32 2147483647, %v873_v55  ;;  %v170_v33 = vsub.f32 0.0, %v150_v6 }
  0x4b   :  { %1416 = vst [vmem:[#allocation32_spill] sm:$0xff] %v951_v27  ;;  %1418 = vst [vmem:[#allocation33_spill] sm:$0xff] %v957_v3  ;;  %590 = vpow2.f32 %v184_v46  ;;  %v192_v63 = vmul.f32 1.442695, %v166_v18  ;;  %v156_v1 = vand.u32 2147483647, %v875_v41 }
  0x4c   :  { %v171_v10 = vsub.f32 0.0, %v151_v8  ;;  %592 = vpow2.f32 %v186_v57  ;;  %v194_v2 = vmul.f32 1.442695, %v167_v28  ;;  %v157_v34 = vand.u32 2147483647, %v878_v43 }
  0x4d   :  { %v172_v29 = vsub.f32 0.0, %v152_v14  ;;  %594 = vpow2.f32 %v188_v21  ;;  %v196_v58 = vmul.f32 1.442695, %v168_v42  ;;  %v158_v54 = vand.u32 2147483647, %v880_v56 }
  0x4e   :  { %v173_v4 = vsub.f32 0.0, %v153_v45  ;;  %596 = vpow2.f32 %v190_v9  ;;  %v198_v62 = vmul.f32 1.442695, %v169_v0  ;;  %v159_v55 = vand.u32 2147483647, %v882_v51 }
  0x4f   :  { %v174_v60 = vsub.f32 0.0, %v154_v24  ;;  %598 = vpow2.f32 %v192_v63  ;;  %v200_v46 = vmul.f32 1.442695, %v170_v33  ;;  %v175_v6 = vsub.f32 0.0, %v155_v25 }
  0x50   :  { %600 = vpow2.f32 %v194_v2  ;;  %v202_v41 = vmul.f32 1.442695, %v171_v10  ;;  %v1419_v32 = vmul.u32 128, %v790_v11  ;;  %v176_v8 = vsub.f32 0.0, %v156_v1  ;;  %v976_v45 = vpop.eup %586 }
  0x51   :  { %v177_v18 = vsub.f32 0.0, %v157_v34  ;;  %602 = vpow2.f32 %v196_v58  ;;  %v204_v48 = vmul.f32 1.442695, %v172_v29  ;;  %v178_v14 = vsub.f32 0.0, %v158_v54 }
  0x52   :  { %v969_v43 = vadd.s32 %v1419_v32, %v782_v7  ;;  %604 = vpow2.f32 %v198_v62  ;;  %v206_v28 = vmul.f32 1.442695, %v173_v4  ;;  %v1421_v57 = vmul.u32 128, %v792_v12 }
  0x53   :  { %v179_v42 = vsub.f32 0.0, %v159_v55  ;;  %606 = vpow2.f32 %v200_v46  ;;  %v208_v21 = vmul.f32 1.442695, %v174_v60  ;;  %v1423_v11 = vmul.u32 128, %v794_v13 }
  0x54   :  { %1420 = vst [vmem:[#allocation34_spill] sm:$0xff] %v969_v43  ;;  %v974_v15 = vadd.s32 %v1421_v57, %v782_v7  ;;  %v983_v0 = vpop.eup %588  ;;  %608 = vpow2.f32 %v202_v41  ;;  %v210_v9 = vmul.f32 1.442695, %v175_v6  ;;  %v478_v25 = vmul.u32 128, %v798_v17 }
  0x55   :  { %v981_v24 = vadd.s32 %v1423_v11, %v782_v7  ;;  %v1425_v12 = vmul.u32 128, %v796_v16  ;;  %v991_v63 = vpop.eup %590  ;;  %610 = vpow2.f32 %v204_v48  ;;  %v212_v1 = vmul.f32 1.442695, %v176_v8 }
  0x56   :  { %1422 = vst [vmem:[#allocation35_spill] sm:$0xff] %v974_v15  ;;  %v214_v10 = vmul.f32 1.442695, %v177_v18  ;;  %v479_v13 = vmul.u32 128, %v800_v22  ;;  %v994_v2 = vpop.eup %592  ;;  %612 = vpow2.f32 %v206_v28  ;;  %v216_v34 = vmul.f32 1.442695, %v178_v14 }
  0x57   :  { %1424 = vst [vmem:[#allocation36_spill] sm:$0xff] %v981_v24  ;;  %v989_v33 = vadd.s32 %v1425_v12, %v782_v7  ;;  %v223_v29 = vmul.f32 -0.5, %v976_v45  ;;  %v480_v17 = vmul.u32 128, %v802_v23  ;;  %v998_v58 = vpop.eup %594  ;;  %614 = vpow2.f32 %v208_v21 }
  0x58   :  { %v218_v16 = vmul.f32 1.442695, %v179_v42  ;;  %v481_v54 = vmul.u32 128, %v804_v30  ;;  %v482_v4 = vmul.u32 128, %v806_v31  ;;  %v1002_v62 = vpop.eup %596  ;;  %616 = vpow2.f32 %v210_v9 }
  0x59   :  { %1426 = vst [vmem:[#allocation37_spill] sm:$0xff] %v989_v33  ;;  %v1007_v60 = vadd.s32 %v478_v25, %v782_v7  ;;  %v1009_v46 = vpop.eup %598  ;;  %618 = vpow2.f32 %v212_v1  ;;  %v220_v23 = vadd.f32 1.0, %v976_v45  ;;  %v232_v6 = vmul.f32 -0.5, %v983_v0 }
  0x5a   :  { %v1014_v30 = vadd.s32 %v479_v13, %v782_v7  ;;  %v1016_v31 = vpop.eup %600  ;;  %620 = vpow2.f32 %v214_v10  ;;  %v224_v41 = vadd.f32 1.0, %v223_v29  ;;  %v229_v32 = vadd.f32 1.0, %v983_v0 }
  0x5b   :  { %1427 = vst [vmem:[#allocation38_spill] sm:$0xff] %v1007_v60  ;;  %v1020_v8 = vadd.s32 %v480_v17, %v782_v7  ;;  %v1022_v18 = vpop.eup %602  ;;  %622 = vpow2.f32 %v216_v34  ;;  %v238_v48 = vadd.f32 1.0, %v991_v63  ;;  %v241_v14 = vmul.f32 -0.5, %v991_v63 }
  0x5c   :  { %1428 = vst [vmem:[#allocation39_spill] sm:$0xff] %v1014_v30  ;;  %v1027_v28 = vadd.s32 %v481_v54, %v782_v7  ;;  %v1029_v57 = vpop.eup %604  ;;  %624 = vpow2.f32 %v218_v16  ;;  %v247_v42 = vadd.f32 1.0, %v994_v2  ;;  %v250_v21 = vmul.f32 -0.5, %v994_v2 }
  0x5d   :  { %1429 = vst [vmem:[#allocation40_spill] sm:$0xff] %v1020_v8  ;;  %v1034_v11 = vadd.s32 %v482_v4, %v782_v7  ;;  %v1036_v9 = vpop.eup %606  ;;  %626 = vlog2.f32 %v220_v23  ;;  %v226_v25 = vand.u32 2147483647, %v976_v45  ;;  %v233_v12 = vadd.f32 1.0, %v232_v6 }
  0x5e   :  { %1430 = vst [vmem:[#allocation41_spill] sm:$0xff] %v1027_v28  ;;  %v256_v1 = vadd.f32 1.0, %v998_v58  ;;  %v1040_v10 = vpop.eup %608  ;;  %v1043_v13 = vmul.f32 %v976_v45, %v224_v41  ;;  %628 = vlog2.f32 %v229_v32  ;;  %v235_v34 = vand.u32 2147483647, %v983_v0 }
  0x5f   :  { %1431 = vst [vmem:[#allocation42_spill] sm:$0xff] %v1034_v11  ;;  %v265_v29 = vadd.f32 1.0, %v1002_v62  ;;  %v1047_v17 = vpop.eup %610  ;;  %630 = vlog2.f32 %v238_v48  ;;  %v242_v16 = vadd.f32 1.0, %v241_v14  ;;  %v244_v54 = vand.u32 2147483647, %v991_v63 }
  0x60   :  { %v274_v4 = vadd.f32 1.0, %v1009_v46  ;;  %v1051_v23 = vpop.eup %612  ;;  %632 = vlog2.f32 %v247_v42  ;;  %v251_v6 = vadd.f32 1.0, %v250_v21  ;;  %v259_v45 = vmul.f32 -0.5, %v998_v58 }
  0x61   :  { %v283_v41 = vadd.f32 1.0, %v1016_v31  ;;  %v1055_v32 = vpop.eup %614  ;;  %v1058_v55 = vmul.f32 %v983_v0, %v233_v12  ;;  %634 = vlog2.f32 %v256_v1  ;;  %v268_v48 = vmul.f32 -0.5, %v1002_v62 }
  0x62   :  { %v292_v14 = vadd.f32 1.0, %v1022_v18  ;;  %v1062_v22 = vpop.eup %616  ;;  %v253_v11 = vand.u32 2147483647, %v994_v2  ;;  %636 = vlog2.f32 %v265_v29  ;;  %v277_v42 = vmul.f32 -0.5, %v1009_v46 }
  0x63   :  { %v301_v21 = vadd.f32 1.0, %v1029_v57  ;;  %v1067_v38 = vpop.eup %618  ;;  %v1070_v5 = vmul.f32 %v991_v63, %v242_v16  ;;  %v262_v0 = vand.u32 2147483647, %v998_v58  ;;  %638 = vlog2.f32 %v274_v4 }
  0x64   :  { %v286_v12 = vmul.f32 -0.5, %v1016_v31  ;;  %v1074_v1 = vpop.eup %620  ;;  %v1077_v51 = vmul.f32 %v994_v2, %v251_v6  ;;  %v260_v29 = vadd.f32 1.0, %v259_v45  ;;  %640 = vlog2.f32 %v283_v41 }
  0x65   :  { %v310_v28 = vadd.f32 1.0, %v1036_v9  ;;  %v1080_v37 = vpop.eup %622  ;;  %vm1082_vm0 = vcmp.lt.f32.partialorder %v226_v25, 0.0004427343  ;;  %vm1086_vm1 = vcmp.lt.f32.partialorder %v235_v34, 0.0004427343  ;;  %v269_v16 = vadd.f32 1.0, %v268_v48 }
  0x66   :  { %v271_v4 = vand.u32 2147483647, %v1002_v62  ;;  %642 = vlog2.f32 %v292_v14  ;;  %v295_v2 = vmul.f32 -0.5, %v1022_v18  ;;  %v1092_v6 = vpop.eup %624  ;;  %vm1094_vm2 = vcmp.lt.f32.partialorder %v244_v54, 0.0004427343 }
  0x67   :  { %vm1098_vm3 = vcmp.lt.f32.partialorder %v253_v11, 0.0004427343  ;;  %v278_v34 = vadd.f32 1.0, %v277_v42  ;;  %v280_v41 = vand.u32 2147483647, %v1009_v46  ;;  %644 = vlog2.f32 %v301_v21  ;;  %v627_v20 = vpop.eup %626 }
  0x68   :  { %v289_v48 = vand.u32 2147483647, %v1016_v31  ;;  %vm1104_vm4 = vcmp.lt.f32.partialorder %v262_v0, 0.0004427343  ;;  %v287_v56 = vadd.f32 1.0, %v286_v12  ;;  %v304_v8 = vmul.f32 -0.5, %v1029_v57  ;;  %v629_v11 = vpop.eup %628 }
  0x69   :  { %v298_v54 = vand.u32 2147483647, %v1022_v18  ;;  %v1111_v30 = vmul.f32 %v998_v58, %v260_v29  ;;  %646 = vlog2.f32 %v310_v28  ;;  %v313_v42 = vmul.f32 -0.5, %v1036_v9  ;;  %v631_v21 = vpop.eup %630 }
  0x6a   :  { %v319_v60 = vadd.f32 1.0, %v1040_v10  ;;  %v1116_v0 = vmul.f32 %v1002_v62, %v269_v16  ;;  %vm1118_vm5 = vcmp.lt.f32.partialorder %v271_v4, 0.0004427343  ;;  %v296_v12 = vadd.f32 1.0, %v295_v2  ;;  %v633_v53 = vpop.eup %632 }
  0x6b   :  { %v307_v33 = vand.u32 2147483647, %v1029_v57  ;;  %v1124_v58 = vmul.f32 %v1009_v46, %v278_v34  ;;  %vm1126_vm6 = vcmp.lt.f32.partialorder %v280_v41, 0.0004427343  ;;  %vm1130_vm7 = vcmp.lt.f32.partialorder %v289_v48, 0.0004427343  ;;  %v635_v16 = vpop.eup %634 }
  0x6c   :  { %v322_v62 = vmul.f32 -0.5, %v1040_v10  ;;  %v1136_v4 = vmul.f32 %v1016_v31, %v287_v56  ;;  %vm1138_vm8 = vcmp.lt.f32.partialorder %v298_v54, 0.0004427343  ;;  %v305_v46 = vadd.f32 1.0, %v304_v8  ;;  %v637_v41 = vpop.eup %636  ;;  %v1452_v31 = vld [vmem:[#allocation14_spill] sm:$0xff] }
  0x6d   :  { %v316_v34 = vand.u32 2147483647, %v1036_v9  ;;  %v222_v24 = vmul.f32 0.6931472, %v627_v20  ;;  %v231_v52 = vmul.f32 0.6931472, %v629_v11  ;;  %648 = vlog2.f32 %v319_v60  ;;  %v639_v15 = vpop.eup %638 }
  0x6e   :  { %v314_v48 = vadd.f32 1.0, %v313_v42  ;;  %v240_v35 = vmul.f32 0.6931472, %v631_v21  ;;  %v249_v43 = vmul.f32 0.6931472, %v633_v53  ;;  %v1144_v3 = vmul.f32 %v1022_v18, %v296_v12  ;;  %v641_v8 = vpop.eup %640  ;;  %v1455_v12 = vld [vmem:[#allocation15_spill] sm:$0xff] }
  0x6f   :  { %vm1146_vm9 = vcmp.lt.f32.partialorder %v307_v33, 0.0004427343  ;;  %vm506_vm11 = vcmp.lt.s32.totalorder %v1452_v31, 20000  ;;  %v258_v54 = vmul.f32 0.6931472, %v635_v16  ;;  %v323_v20 = vadd.f32 1.0, %v322_v62 }
  0x70   :  { %v325_v11 = vand.u32 2147483647, %v1040_v10  ;;  %v331_v60 = vmul.f32 -0.5, %v1047_v17  ;;  %v643_v42 = vpop.eup %642  ;;  %v267_v53 = vmul.f32 0.6931472, %v637_v41  ;;  %v1155_v18 = vmul.f32 %v1029_v57, %v305_v46 }
  0x71   :  { %vm1157_vm12 = vcmp.lt.f32.partialorder %v316_v34, 0.0004427343  ;;  %v328_v21 = vadd.f32 1.0, %v1047_v17  ;;  %vm507_vm13 = vcmp.lt.s32.totalorder %v1455_v12, 20000  ;;  %v645_v47 = vpop.eup %644  ;;  %v228_v62 = vsel %vm1082_vm0, %v1043_v13, %v222_v24  ;;  %v1456_v24 = vld [vmem:[#allocation16_spill] sm:$0xff] }
  0x72   :  { %v237_v16 = vsel %vm1086_vm1, %v1058_v55, %v231_v52  ;;  %v1170_v57 = vmul.f32 %v1036_v9, %v314_v48  ;;  %v340_v46 = vmul.f32 -0.5, %v1051_v23  ;;  %v246_v34 = vsel %vm1094_vm2, %v1070_v5, %v240_v35 }
  0x73   :  { %v255_v41 = vsel %vm1098_vm3, %v1077_v51, %v249_v43  ;;  %v276_v27 = vmul.f32 0.6931472, %v639_v15  ;;  %v1179_v7 = vmul.f32 0.6931472, %v641_v8  ;;  %vm508_vm14 = vcmp.lt.s32.totalorder %v1456_v24, 20000  ;;  %v647_v13 = vpop.eup %646 }
  0x74   :  { %v264_v52 = vsel %vm1104_vm4, %v1111_v30, %v258_v54  ;;  %v1185_v55 = vmul.f32 0.6931472, %v643_v42  ;;  %v1188_v9 = vmul.f32 %v1040_v10, %v323_v20  ;;  %vm1190_vm15 = vcmp.lt.f32.partialorder %v325_v11, 0.0004427343  ;;  %v1461_v11 = vld [vmem:[#allocation17_spill] sm:$0xff] }
  0x75   :  { %v332_v51 = vadd.f32 1.0, %v331_v60  ;;  %v273_v5 = vsel %vm1118_vm5, %v1116_v0, %v267_v53  ;;  %v1197_v43 = vmul.f32 0.6931472, %v645_v47  ;;  %650 = vlog2.f32 %v328_v21 }
  0x76   :  { %v337_v15 = vadd.f32 1.0, %v1051_v23  ;;  %v334_v30 = vand.u32 2147483647, %v1047_v17  ;;  %v341_v63 = vadd.f32 1.0, %v340_v46  ;;  %v400_v10 = vadd.f32 %v228_v62, %v901_v36 }
  0x77   :  { %v401_v45 = vadd.f32 %v237_v16, %v903_v26  ;;  %v282_v25 = vsel %vm1126_vm6, %v1124_v58, %v276_v27  ;;  %v291_v47 = vsel %vm1130_vm7, %v1136_v4, %v1179_v7  ;;  %v1210_v61 = vmul.f32 0.6931472, %v647_v13  ;;  %v649_v0 = vpop.eup %648  ;;  %v1462_v16 = vld [vmem:[#allocation18_spill] sm:$0xff] }
  0x78   :  { %v346_v14 = vadd.f32 1.0, %v1055_v32  ;;  %v300_v36 = vsel %vm1138_vm8, %v1144_v3, %v1185_v55  ;;  %v1218_v26 = vmul.f32 %v1047_v17, %v332_v51  ;;  %v349_v27 = vmul.f32 -0.5, %v1055_v32 }
  0x79   :  { %v402_v58 = vadd.f32 %v246_v34, %v905_v44  ;;  %v309_v28 = vsel %vm1146_vm9, %v1155_v18, %v1197_v43  ;;  %652 = vlog2.f32 %v337_v15  ;;  %v343_v29 = vand.u32 2147483647, %v1051_v23 }
  0x7a   :  { %v355_v4 = vadd.f32 1.0, %v1062_v22  ;;  %v1229_v2 = vmul.f32 %v1051_v23, %v341_v63  ;;  %v403_v3 = vadd.f32 %v255_v41, %v908_v59  ;;  %v525_v17 = vsel %vm505_vm10, %v400_v10, 0.0  ;;  %v1478_v23 = vld [vmem:[#allocation35_spill] sm:$0xff] }
  0x7b   :  { %v526_v44 = vsel %vm506_vm11, %v401_v45, 0.0  ;;  %v318_v48 = vsel %vm1157_vm12, %v1170_v57, %v1210_v61  ;;  %v1240_v56 = vmul.f32 0.6931472, %v649_v0  ;;  %654 = vlog2.f32 %v346_v14 }
  0x7c   :  { %v352_v8 = vand.u32 2147483647, %v1055_v32  ;;  %vm1243_vm0 = vcmp.lt.f32.partialorder %v334_v30, 0.0004427343  ;;  %v350_v59 = vadd.f32 1.0, %v349_v27  ;;  %v364_v39 = vadd.f32 1.0, %v1067_v38 }
  0x7d   :  { %v404_v31 = vadd.f32 %v264_v52, %v910_v50  ;;  %v527_v54 = vsel %vm507_vm13, %v402_v58, 0.0  ;;  %656 = vlog2.f32 %v355_v4  ;;  %v358_v20 = vmul.f32 -0.5, %v1062_v22  ;;  %v1465_v52 = vld [vmem:[#allocation19_spill] sm:$0xff]  ;;  %v1468_v30 = vld [vmem:[#allocation32_spill] sm:$0xff] }
  0x7e   :  { %vm509_vm1 = vcmp.lt.s32.totalorder %v1461_v11, 20000  ;;  %v545_v60 = vadd.f32 %v526_v44, %v525_v17  ;;  %v361_v42 = vand.u32 2147483647, %v1062_v22  ;;  %v373_v53 = vadd.f32 1.0, %v1074_v1 }
  0x7f   :  { %v405_v18 = vadd.f32 %v273_v5, %v912_v49  ;;  %v528_v21 = vsel %vm508_vm14, %v403_v3, 0.0  ;;  %v651_v62 = vpop.eup %650  ;;  %v327_v50 = vsel %vm1190_vm15, %v1188_v9, %v1240_v56  ;;  %v367_v12 = vmul.f32 -0.5, %v1067_v38  ;;  %v1475_v3 = vld [vmem:[#allocation23_spill] sm:$0xff] }
  0x80   :  { %vm510_vm2 = vcmp.lt.s32.totalorder %v1462_v16, 20000  ;;  %v546_v46 = vadd.f32 %v545_v60, %v527_v54  ;;  %vm1264_vm3 = vcmp.lt.f32.partialorder %v343_v29, 0.0004427343  ;;  %658 = vlog2.f32 %v364_v39  ;;  %v1477_v54 = vld [vmem:[#allocation24_spill] sm:$0xff] }
  0x81   :  { %v382_v49 = vadd.f32 1.0, %v1080_v37  ;;  %v406_v41 = vadd.f32 %v282_v25, %v915_v40  ;;  %v529_v7 = vsel %vm509_vm1, %v404_v31, 0.0  ;;  %v359_v24 = vadd.f32 1.0, %v358_v20  ;;  %v1471_v25 = vld [vmem:[#allocation22_spill] sm:$0xff] }
  0x82   :  { %v370_v13 = vand.u32 2147483647, %v1067_v38  ;;  %vm511_vm4 = vcmp.lt.s32.totalorder %v1465_v52, 20000  ;;  %v547_v55 = vadd.f32 %v546_v46, %v528_v21  ;;  %vm1272_vm5 = vcmp.lt.f32.partialorder %v352_v8, 0.0004427343  ;;  %v1476_v8 = vld [vmem:[#allocation34_spill] sm:$0xff] }
  0x83   :  { %660 = vlog2.f32 %v373_v53  ;;  %v391_v35 = vadd.f32 1.0, %v1092_v6  ;;  %v407_v51 = vadd.f32 %v291_v47, %v917_v19  ;;  %v530_v5 = vsel %vm510_vm2, %v405_v18, 0.0  ;;  %v653_v43 = vpop.eup %652  ;;  %v1481_v18 = vld [vmem:[#allocation25_spill] sm:$0xff] }
  0x84   :  { %v330_v15 = vmul.f32 0.6931472, %v651_v62  ;;  %v351_v40 = vmul.f32 %v1055_v32, %v350_v59  ;;  %vm512_vm6 = vcmp.lt.s32.totalorder %v1468_v30, 20000  ;;  %v548_v63 = vadd.f32 %v547_v55, %v529_v7  ;;  %v1472_v32 = vld [vmem:[#allocation33_spill] sm:$0xff]  ;;  %v1486_v30 = vld [vmem:[#allocation38_spill] sm:$0xff] }
  0x85   :  { %vm1280_vm7 = vcmp.lt.f32.partialorder %v361_v42, 0.0004427343  ;;  %v368_v45 = vadd.f32 1.0, %v367_v12  ;;  %662 = vlog2.f32 %v382_v49  ;;  %v408_v14 = vadd.f32 %v300_v36, %v1471_v25  ;;  %v655_v19 = vpop.eup %654  ;;  %v1483_v49 = vld [vmem:[#allocation26_spill] sm:$0xff]  ;;  %v1487_v25 = vld [vmem:[#allocation28_spill] sm:$0xff] }
  0x86   :  { %v531_v0 = vsel %vm511_vm4, %v406_v41, 0.0  ;;  %v360_v47 = vmul.f32 %v1062_v22, %v359_v24  ;;  %v376_v27 = vmul.f32 -0.5, %v1074_v1  ;;  %vm513_vm8 = vcmp.lt.s32.totalorder %v1472_v32, 20000 }
  0x87   :  { %v549_v58 = vadd.f32 %v548_v63, %v530_v5  ;;  %vm1290_vm9 = vcmp.lt.f32.partialorder %v370_v13, 0.0004427343  ;;  %v379_v4 = vand.u32 2147483647, %v1074_v1  ;;  %664 = vlog2.f32 %v391_v35  ;;  %v657_v44 = vpop.eup %656  ;;  %v1484_v13 = vld [vmem:[#allocation37_spill] sm:$0xff]  ;;  %v1485_v35 = vld [vmem:[#allocation27_spill] sm:$0xff] }
  0x88   :  { %v409_v36 = vadd.f32 %v309_v28, %v1475_v3  ;;  %v532_v17 = vsel %vm512_vm6, %v407_v51, 0.0  ;;  %v336_v22 = vsel %vm1243_vm0, %v1218_v26, %v330_v15  ;;  %v339_v56 = vmul.f32 0.6931472, %v653_v43 }
  0x89   :  { %vm514_vm10 = vcmp.lt.s32.totalorder %v1476_v8, 20000  ;;  %v550_v59 = vadd.f32 %v549_v58, %v531_v0  ;;  %v369_v39 = vmul.f32 %v1067_v38, %v368_v45  ;;  %v385_v31 = vmul.f32 -0.5, %v1080_v37  ;;  %v1491_v58 = vld [vmem:[#allocation29_spill] sm:$0xff] }
  0x8a   :  { %v410_v28 = vadd.f32 %v318_v48, %v1477_v54  ;;  %v533_v20 = vsel %vm513_vm8, %v408_v14, 0.0  ;;  %v348_v11 = vmul.f32 0.6931472, %v655_v19  ;;  %v377_v60 = vadd.f32 1.0, %v376_v27  ;;  %v659_v42 = vpop.eup %658  ;;  %v1482_v48 = vld [vmem:[#allocation36_spill] sm:$0xff]  ;;  %v1488_v27 = vld [vmem:[#allocation39_spill] sm:$0xff] }
  0x8b   :  { %vm515_vm11 = vcmp.lt.s32.totalorder %v1478_v23, 20000  ;;  %v551_v26 = vadd.f32 %v550_v59, %v532_v17  ;;  %vm1311_vm13 = vcmp.lt.f32.partialorder %v379_v4, 0.0004427343  ;;  %v394_v38 = vmul.f32 -0.5, %v1092_v6  ;;  %v1492_v17 = vld [vmem:[#allocation40_spill] sm:$0xff]  ;;  %v1497_v59 = vld [vmem:[#allocation30_spill] sm:$0xff] }
  0x8c   :  { %v411_v21 = vadd.f32 %v327_v50, %v1481_v18  ;;  %v534_v33 = vsel %vm514_vm10, %v409_v36, 0.0  ;;  %v345_v57 = vsel %vm1264_vm3, %v1229_v2, %v339_v56  ;;  %v357_v61 = vmul.f32 0.6931472, %v657_v44  ;;  %v1493_v44 = vld [vmem:[#allocation20_spill] sm:$0xff]  ;;  %v1498_v54 = vld [vmem:[#allocation11_spill] sm:$0xff] }
  0x8d   :  { %vm516_vm12 = vcmp.lt.s32.totalorder %v1482_v48, 20000  ;;  %v552_v62 = vadd.f32 %v551_v26, %v533_v20  ;;  %v661_v12 = vpop.eup %660  ;;  %v386_v16 = vadd.f32 1.0, %v385_v31  ;;  %v388_v46 = vand.u32 2147483647, %v1080_v37  ;;  %v1502_v26 = vld [vmem:[#allocation21_spill] sm:$0xff] }
  0x8e   :  { %v412_v41 = vadd.f32 %v336_v22, %v1483_v49  ;;  %v535_v7 = vsel %vm515_vm11, %v410_v28, 0.0  ;;  %v354_v24 = vsel %vm1272_vm5, %v351_v40, %v348_v11  ;;  %v366_v50 = vmul.f32 0.6931472, %v659_v42  ;;  %v1499_v28 = vld [vmem:[#allocation12_spill] sm:$0xff] }
  0x8f   :  { %vm517_vm14 = vcmp.lt.s32.totalorder %v1484_v13, 20000  ;;  %v553_v52 = vadd.f32 %v552_v62, %v534_v33  ;;  %v663_v34 = vpop.eup %662  ;;  %v378_v2 = vmul.f32 %v1074_v1, %v377_v60  ;;  %v395_v55 = vadd.f32 1.0, %v394_v38  ;;  %v1501_v60 = vld [vmem:[#allocation41_spill] sm:$0xff]  ;;  %v1504_v38 = vld [vmem:[#allocation31_spill] sm:$0xff]  ;;  %v1507_v62 = vld [vmem:[#allocation42_spill] sm:$0xff] }
  0x90   :  { %v413_v51 = vadd.f32 %v345_v57, %v1485_v35  ;;  %v536_v5 = vsel %vm516_vm12, %v411_v21, 0.0  ;;  %v363_v43 = vsel %vm1280_vm7, %v360_v47, %v357_v61  ;;  %v375_v15 = vmul.f32 0.6931472, %v661_v12  ;;  %v1505_v57 = vld [vmem:[#allocation13_spill] sm:$0xff] }
  0x91   :  { %vm518_vm15 = vcmp.lt.s32.totalorder %v1486_v30, 20000  ;;  %v554_v63 = vadd.f32 %v553_v52, %v535_v7  ;;  %v665_v9 = vpop.eup %664  ;;  %v387_v40 = vmul.f32 %v1080_v37, %v386_v16  ;;  %v397_v45 = vand.u32 2147483647, %v1092_v6 }
  0x92   :  { %v414_v14 = vadd.f32 %v354_v24, %v1487_v25  ;;  %v537_v0 = vsel %vm517_vm14, %v412_v41, 0.0  ;;  %v372_v1 = vsel %vm1290_vm9, %v369_v39, %v366_v50  ;;  %v384_v19 = vmul.f32 0.6931472, %v663_v34 }
  0x93   :  { %vm519_vm0 = vcmp.lt.s32.totalorder %v1488_v27, 20000  ;;  %v555_v10 = vadd.f32 %v554_v63, %v536_v5  ;;  %vm1337_vm1 = vcmp.lt.f32.partialorder %v388_v46, 0.0004427343  ;;  %v396_v32 = vmul.f32 %v1092_v6, %v395_v55 }
  0x94   :  { %v415_v37 = vadd.f32 %v363_v43, %v1491_v58  ;;  %v538_v4 = vsel %vm518_vm15, %v413_v51, 0.0  ;;  %v381_v3 = vsel %vm1311_vm13, %v378_v2, %v375_v15  ;;  %v393_v36 = vmul.f32 0.6931472, %v665_v9 }
  0x95   :  { %vm520_vm2 = vcmp.lt.s32.totalorder %v1492_v17, 20000  ;;  %v556_v29 = vadd.f32 %v555_v10, %v537_v0  ;;  %v1494_v22 = vsub.f32 0.0, %v1493_v44  ;;  %vm1348_vm3 = vcmp.lt.f32.partialorder %v397_v45, 0.0004427343 }
  0x96   :  { %v416_v39 = vadd.f32 %v372_v1, %v1497_v59  ;;  %v539_v6 = vsel %vm519_vm0, %v414_v14, 0.0  ;;  %v390_v31 = vsel %vm1337_vm1, %v387_v40, %v384_v19  ;;  %v1500_v20 = vmul.u32 128, %v1499_v28 }
  0x97   :  { %v138_v56 = vmax.f32 %v1494_v22, 0.0  ;;  %vm521_vm4 = vcmp.lt.s32.totalorder %v1501_v60, 20000  ;;  %v557_v23 = vadd.f32 %v556_v29, %v538_v4  ;;  %v1503_v42 = vsub.f32 0.0, %v1502_v26 }
  0x98   :  { %v503_v11 = vadd.s32 %v1500_v20, %v1498_v54  ;;  %v417_v18 = vadd.f32 %v381_v3, %v1504_v38  ;;  %v540_v21 = vsel %vm520_vm2, %v415_v37, 0.0  ;;  %v399_v33 = vsel %vm1348_vm3, %v396_v32, %v393_v36 }
  0x99   :  { %v139_v53 = vmax.f32 %v1503_v42, 0.0  ;;  %v1506_v61 = vmul.u32 128, %v1505_v57  ;;  %vm522_vm5 = vcmp.lt.s32.totalorder %v1507_v62, 20000  ;;  %v558_v12 = vadd.f32 %v557_v23, %v539_v6 }
  0x9a   :  { %v418_v16 = vadd.f32 %v390_v31, %v138_v56  ;;  %v541_v46 = vsel %vm521_vm4, %v416_v39, 0.0  ;;  %vm523_vm6 = vcmp.lt.s32.totalorder %v503_v11, 20000  ;;  %v542_v7 = vsel %vm522_vm5, %v417_v18, 0.0 }
  0x9b   :  { %v504_v48 = vadd.s32 %v1506_v61, %v1498_v54  ;;  %v559_v49 = vadd.f32 %v558_v12, %v540_v21  ;;  %v419_v41 = vadd.f32 %v399_v33, %v139_v53 }
  0x9c   :  { %v543_v50 = vsel %vm523_vm6, %v418_v16, 0.0 }
  0x9d   :  { %vm524_vm7 = vcmp.lt.s32.totalorder %v504_v48, 20000  ;;  %v560_v24 = vadd.f32 %v559_v49, %v541_v46 }
  0x9e   :  { %v544_v52 = vsel %vm524_vm7, %v419_v41, 0.0 }
  0x9f   :  { %v561_v13 = vadd.f32 %v560_v24, %v542_v7 }
  0xa1   :  { %v562_v34 = vadd.f32 %v561_v13, %v543_v50 }
  0xa3   :  { %v563_v2 = vadd.f32 %v562_v34, %v544_v52 }
  0xa5   :  { %564 = vst [vmem:[#allocation7] sm:$0xff] %v563_v2 }
  0xa6   :  { %721 = shalt.err (!%p718_p6)
}
  0xa7   :  { %s722_s10 = scalar_lea.hbm %s1382_s2, 128 }
  0xa8   :  { %p723_p7 = scmp.ne.s32.totalorder %s1382_s2, %s722_s10  ;;  %p726_p8 = scmp.lt.u32.totalorder %s722_s10, %s1382_s2 }
  0xaa   :  { %p728_p9 = pnand %p726_p8, %p723_p7 }
  0xac   :  { %731 = shalt.err (!%p728_p9)
}
  0xad   :  { %574 = dma.vmem_to_hbm [thread:$0]  %s572_s6, 128, %s1382_s2, [#allocation4]  }
  0xae   :  { %736 = dma.done.wait [#allocation4], 128  }
  0xaf   :  { %737 = vsyncadd [#allocation4], 4294967168 }
  0xb0   :  { %578 = vsyncpa [#allocation3], 1 }
  0xb1   :  { %579 = vsyncpa [#allocation6], 1 }
  0xb2   :  { %580 = vsyncpa [#allocation4], 1 }

</bundles_post_ra>
